<compile_context>
chip_gen: v7x
topology: tpu7x:2x2x1
jax: 0.10.0
libtpu: 0.0.40
codegen_flags: <defaults>
</compile_context>

<pallas_src>
import functools

import jax
import jax.numpy as jnp
from jax.experimental import pallas as pl
from jax.experimental.pallas import tpu as pltpu


def _round_up(a: int, m: int) -> int:
    return ((a + m - 1) // m) * m


def _vmem_capacity_bytes() -> int:
    try:
        cap = getattr(pltpu.get_tpu_info(), "vmem_capacity_bytes", None)
        if cap:
            return int(cap)
    except Exception:
        pass
    return 64 << 20  # conservative fallback (v7x-sized VMEM)


def _pick_tn(h_pad: int, fits) -> int:
    """Largest multiple of 128 that divides h_pad and satisfies `fits`."""
    q = h_pad // 128
    for d in range(q, 0, -1):
        if q % d == 0 and fits(128 * d):
            return 128 * d
    return 128


def _residual_kernel_full(x_ref, w_ref, b_ref, o_ref, *, mm_dtype):
    # fn(x) = x @ W + b on the MXU, fused with the residual add on the VPU.
    x = x_ref[...]                                           # (tm, H_pad)
    fx = jnp.dot(x.astype(mm_dtype), w_ref[...],
                 preferred_element_type=jnp.float32)         # (tm, H_pad) f32
    fx = fx + b_ref[...].astype(jnp.float32)
    o_ref[...] = (fx + x.astype(jnp.float32)).astype(o_ref.dtype)


def _residual_kernel_ntiled(x_ref, w_ref, b_ref, xres_ref, o_ref, *, mm_dtype):
    # Same, but W is column-blocked; residual comes from the matching column
    # block of x (separate lane-aligned input, no dynamic lane slicing).
    fx = jnp.dot(x_ref[...].astype(mm_dtype), w_ref[...],
                 preferred_element_type=jnp.float32)         # (tm, tn) f32
    fx = fx + b_ref[...].astype(jnp.float32)
    o_ref[...] = (fx + xres_ref[...].astype(jnp.float32)).astype(o_ref.dtype)


def residual_add(x, w, b, *, tm: int = 1024, matmul_in_bf16: bool = True,
                 _force_tn: int | None = None):
    """out = fn(x) + x with fn(x) = x @ w + b.

    x: (B, S, H)   w: (H, H)   b: (H,)
    """
    B, S, H = x.shape
    M = B * S

    mm_dtype = jnp.bfloat16 if matmul_in_bf16 else w.dtype
    x_isz = jnp.dtype(x.dtype).itemsize
    w_isz = jnp.dtype(mm_dtype).itemsize          # actual dtype resident in VMEM

    pad_h = (H % 128) != 0
    H_pad = _round_up(H, 128) if pad_h else H     # always a multiple of 128

    vmem_cap = _vmem_capacity_bytes()
    budget = int(vmem_cap * 0.75)                 # ~96 MiB on 128-MiB parts, ~48 MiB on v7x
    limit_cap = int(vmem_cap * 0.85)

    def footprint(tm_, tn_):
        fp = (2 * H_pad * tn_ * w_isz             # W blocks (double-buffered by Pallas)
              + 2 * tm_ * H_pad * x_isz           # x tiles
              + 2 * tm_ * tn_ * x_isz             # out tiles
              + 2 * tn_ * 4)                      # bias
        if tn_ < H_pad:
            fp += 2 * tm_ * tn_ * x_isz           # residual column tiles (N-tiled path)
        return fp

    # --- choose tm / tn -------------------------------------------------
    tm_req = tm
    tm = max(8, _round_up(min(tm, _round_up(M, 8)), 8))
    while tm > 256 and footprint(tm, H_pad) > budget:
        tm //= 2

    tn = H_pad
    if footprint(tm, H_pad) > budget:
        # W no longer fits resident: tile the output-column (N) axis instead of
        # starving the MXU with tiny tm.
        tn = _pick_tn(H_pad, lambda tn_: footprint(tm, tn_) <= budget)
        if footprint(tm, tn) > budget and tm > 128:
            tm = 128
            tn = _pick_tn(H_pad, lambda tn_: footprint(128, tn_) <= budget)
        # Grow tm back while it still fits.
        while tm * 2 <= tm_req and footprint(tm * 2, tn) <= budget:
            tm *= 2
    if _force_tn is not None:                     # test hook (must divide H_pad)
        tn = _force_tn

    # >= 2 grid steps along M when possible (pipelining; v7x 2-TC sharding).
    if M <= 8:
        tm = M
    elif pl.cdiv(M, tm) < 2:
        tm = _round_up(-(-M // 2), 8)

    m_tiles = pl.cdiv(M, tm)
    n_tiles = H_pad // tn
    grid = (m_tiles, n_tiles)

    # --- build operands (no M padding; H padded only when needed) --------
    x2 = x.reshape(M, H)
    if pad_h:
        x2 = jnp.pad(x2, ((0, 0), (0, H_pad - H)))
        wp = jnp.pad(w, ((0, H_pad - H), (0, H_pad - H)))
        bp = jnp.pad(b, (0, H_pad - H))
    else:
        wp, bp = w, b
    wp = wp.astype(mm_dtype)                      # bf16 cast hoisted out of the kernel
    bp = bp.astype(jnp.float32).reshape(1, H_pad)

    fp = footprint(tm, tn)
    vmem_limit = int(min(limit_cap, max(2 * fp, 32 << 20)))

    bytes_accessed = int(
        M * H_pad * x_isz                                        # x in
        + H_pad * H_pad * w_isz * (m_tiles if n_tiles > 1 else 1)  # W (re)reads
        + H_pad * 4                                              # bias
        + M * H_pad * x_isz)                                     # out
    cost = pl.CostEstimate(flops=2 * M * H_pad * H_pad,
                           transcendentals=0,
                           bytes_accessed=bytes_accessed)

    compiler_params = pltpu.CompilerParams(
        dimension_semantics=("parallel", "parallel"),
        vmem_limit_bytes=vmem_limit,
    )

    if n_tiles == 1:
        kernel = functools.partial(_residual_kernel_full, mm_dtype=mm_dtype)
        in_specs = [
            pl.BlockSpec((tm, H_pad), lambda i, j: (i, 0)),    # x row tile (full K)
            pl.BlockSpec((H_pad, H_pad), lambda i, j: (0, 0)),  # W (resident)
            pl.BlockSpec((1, H_pad), lambda i, j: (0, 0)),      # b (resident)
        ]
        operands = (x2, wp, bp)
    else:
        kernel = functools.partial(_residual_kernel_ntiled, mm_dtype=mm_dtype)
        in_specs = [
            pl.BlockSpec((tm, H_pad), lambda i, j: (i, 0)),    # x row tile (full K)
            pl.BlockSpec((H_pad, tn), lambda i, j: (0, j)),    # W column block
            pl.BlockSpec((1, tn), lambda i, j: (0, j)),        # bias column block
            pl.BlockSpec((tm, tn), lambda i, j: (i, j)),       # residual column block
        ]
        operands = (x2, wp, bp, x2)

    out = pl.pallas_call(
        kernel,
        out_shape=jax.ShapeDtypeStruct((M, H_pad), x.dtype),
        grid=grid,
        in_specs=in_specs,
        out_specs=pl.BlockSpec((tm, tn), lambda i, j: (i, j)),
        compiler_params=compiler_params,
        cost_estimate=cost,
    )(*operands)

    if pad_h:
        out = out[:, :H]
    return out.reshape(B, S, H)


if __name__ == "__main__":
    key = jax.random.PRNGKey(0)
    k_x, k_w, k_b = jax.random.split(key, 3)

    B, S, H = 2, 8, 32
    x = jax.random.normal(k_x, (B, S, H), dtype=jnp.float32)
    # Deterministic parameter init for fn (Linear H->H), kaiming-ish scale.
    w = jax.random.normal(k_w, (H, H), dtype=jnp.float32) * (1.0 / jnp.sqrt(H))
    b = jax.random.normal(k_b, (H,), dtype=jnp.float32) * 0.01

    # 1) default bf16-MXU path (f32 accumulate + f32 bias/residual adds).
    out = residual_add(x, w, b)
    jax.block_until_ready(out)
    ref_bf16 = jnp.einsum(
        "bsh,hk->bsk",
        x.astype(jnp.bfloat16).astype(jnp.float32),
        w.astype(jnp.bfloat16).astype(jnp.float32)) + b + x
    assert jnp.allclose(out, ref_bf16, atol=2e-3, rtol=2e-3), "bf16 path mismatch"

    # 2) f32 matmul path, tight tolerance.
    out_f32 = residual_add(x, w, b, matmul_in_bf16=False)
    jax.block_until_ready(out_f32)
    ref_f32 = jnp.einsum("bsh,hk->bsk", x, w) + b + x
    assert jnp.allclose(out_f32, ref_f32, atol=1e-4, rtol=1e-4), "f32 path mismatch"

    # 3) exercise the N-tiled (column-blocked W) fallback on a slightly larger H.
    H2 = 256
    k_x2, k_w2, k_b2 = jax.random.split(jax.random.PRNGKey(1), 3)
    x2 = jax.random.normal(k_x2, (B, S, H2), dtype=jnp.float32)
    w2 = jax.random.normal(k_w2, (H2, H2), dtype=jnp.float32) * (1.0 / jnp.sqrt(H2))
    b2 = jax.random.normal(k_b2, (H2,), dtype=jnp.float32) * 0.01
    out2 = residual_add(x2, w2, b2, matmul_in_bf16=False, _force_tn=128)
    jax.block_until_ready(out2)
    ref2 = jnp.einsum("bsh,hk->bsk", x2, w2) + b2 + x2
    assert jnp.allclose(out2, ref2, atol=1e-3, rtol=1e-3), "N-tiled path mismatch"

    print("KERNEL_OK")
</pallas_src>

<mosaic_0001>
module attributes {stable_mosaic.version = 11 : i64} {
  func.func @_residual_kernel_full(%arg0: i32, %arg1: i32, %arg2: memref<8x128xf32, #tpu.memory_space<vmem>>, %arg3: memref<128x128xbf16, #tpu.memory_space<vmem>>, %arg4: memref<1x128xf32, #tpu.memory_space<vmem>>, %arg5: memref<8x128xf32, #tpu.memory_space<vmem>>) attributes {dimension_semantics = [#tpu.dimension_semantics<parallel>, #tpu.dimension_semantics<parallel>], iteration_bounds = array<i64: 2, 1>, scalar_prefetch = 0 : i64, scratch_operands = 0 : i64, tpu.core_type = #tpu.core_type<tc>, window_params = [{transform_indices = @transform_0, window_bounds = array<i64: 8, 128>}, {pipeline_mode = #tpu.pipeline_mode<synchronous>, transform_indices = @transform_1, window_bounds = array<i64: 128, 128>}, {pipeline_mode = #tpu.pipeline_mode<synchronous>, transform_indices = @transform_2, window_bounds = array<i64: 1, 128>}, {transform_indices = @transform_3, window_bounds = array<i64: 8, 128>}]} {
    %c0 = arith.constant 0 : index
    %c0_0 = arith.constant 0 : index
    %0 = vector.load %arg2[%c0, %c0_0] : memref<8x128xf32, #tpu.memory_space<vmem>>, vector<8x128xf32>
    %1 = arith.truncf %0 : vector<8x128xf32> to vector<8x128xbf16>
    %c0_1 = arith.constant 0 : index
    %c0_2 = arith.constant 0 : index
    %2 = vector.load %arg3[%c0_1, %c0_2] : memref<128x128xbf16, #tpu.memory_space<vmem>>, vector<128x128xbf16>
    %cst = arith.constant dense<0.000000e+00> : vector<8x128xf32>
    %3 = tpu.matmul %1, %2, %cst {dimension_numbers = #tpu.dot_dimension_numbers<[1], [0], [0], [1], [0, 0, 1, 1], [], []>} : vector<8x128xbf16>, vector<128x128xbf16>, vector<8x128xf32> -> vector<8x128xf32>
    %c0_3 = arith.constant 0 : index
    %c0_4 = arith.constant 0 : index
    %4 = vector.load %arg4[%c0_3, %c0_4] : memref<1x128xf32, #tpu.memory_space<vmem>>, vector<1x128xf32>
    %5 = vector.broadcast %4 : vector<1x128xf32> to vector<8x128xf32>
    %6 = arith.addf %3, %5 : vector<8x128xf32>
    %7 = arith.addf %6, %0 : vector<8x128xf32>
    %c0_5 = arith.constant 0 : index
    %c0_6 = arith.constant 0 : index
    %8 = vector.load %arg5[%c0_5, %c0_6] : memref<8x128xf32, #tpu.memory_space<vmem>>, vector<8x128xf32>
    tpu.vector_store %arg5[%c0_5, %c0_6], %7 {strides = array<i32>} : memref<8x128xf32, #tpu.memory_space<vmem>>, vector<8x128xf32>,
    return
  }
  func.func @transform_0(%arg0: i32, %arg1: i32) -> (i32, i32) {
    %c0_i32 = arith.constant 0 : i32
    %c0_i32_0 = arith.constant 0 : i32
    return %arg0, %c0_i32 : i32, i32
  }
  func.func @transform_1(%arg0: i32, %arg1: i32) -> (i32, i32) {
    %c0_i32 = arith.constant 0 : i32
    %c0_i32_0 = arith.constant 0 : i32
    %c0_i32_1 = arith.constant 0 : i32
    return %c0_i32, %c0_i32_0 : i32, i32
  }
  func.func @transform_2(%arg0: i32, %arg1: i32) -> (i32, i32) {
    %c0_i32 = arith.constant 0 : i32
    %c0_i32_0 = arith.constant 0 : i32
    %c0_i32_1 = arith.constant 0 : i32
    return %c0_i32, %c0_i32_0 : i32, i32
  }
  func.func @transform_3(%arg0: i32, %arg1: i32) -> (i32, i32) {
    %c0_i32 = arith.constant 0 : i32
    return %arg0, %arg1 : i32, i32
  }
}

</mosaic_0001>

<bundles_post_ra>
// kernel: tpu_custom_call.1
= control target key start
LH: loop header
LB: loop body
LE: loop exit
PB: predicated region body
PF: predicated region fallthrough
CT: control target
= control target key end

     0   :  { %8 = vsyncpa [#allocation3], 0  ;;  %s967_s0 = inlined_call_operand.hbm [shape: f32[16,128], index: 0, kind: input, shape index: {}]   ;;  %s968_s1 = inlined_call_operand.hbm [shape: bf16[128,128], index: 1, kind: input, shape index: {}]   ;;  %s969_s2 = inlined_call_operand.vmem [shape: f32[1,128], index: 2, kind: input, shape index: {}]   ;;  %s970_s3 = inlined_call_operand.hbm [shape: f32[16,128], index: 3, kind: output, shape index: {}]  }
   0x1   :  { %10 = vsyncpa [#allocation3 + $0x1], 0 }
   0x2   :  { %11 = vsyncpa [#allocation6], 0 }
   0x3   :  { %12 = vsyncpa [#allocation4], 0 }
   0x4   :  { %14 = vsyncpa [#allocation4 + $0x1], 0  ;;  %s746_s12 = smov 0   ;;  %s748_s13 = smov 0  }
   0x5   :  { %s750_s14 = smov 0   ;;  %s752_s15 = smov 0  }
   0x6   :  { %s754_s16 = smov 0   ;;  %s756_s17 = smov 0  }
   0x7 LB: > { %s435_s18 = sadd.s32 4294967295, %s717_s17   ;;  %s436_s19 = sadd.s32 4294967294, %s717_s17   ;;  %s717_s17 = sphi %s756_s17, %s20_s17   ;;  %s713_s16 = sphi %s754_s16, %s994_s16   ;;  %s709_s15 = sphi %s752_s15, %s993_s15   ;;  %s705_s14 = sphi %s750_s14, %s992_s14   ;;  %s701_s13 = sphi %s748_s13, %s991_s13   ;;  %s697_s12 = sphi %s746_s12, %s990_s12  }
   0x8   : > { %p52_p0 = scmp.ne.s32.totalorder %s701_s13, %s697_s12  ;;  %p780_p1 = scmp.eq.s32.totalorder %s435_s18, 0 }
   0x9   : > { %p784_p2 = scmp.eq.s32.totalorder %s435_s18, 1  ;;  %p126_p3 = scmp.eq.s32.totalorder %s436_s19, 1 }
   0xa   : > { %s975_s20 = scalar_select %p780_p1, 1, 0 }
   0xb   : > { %s976_s21 = scalar_select %p784_p2, 1, 0 }
   0xc   : > { %p790_p4 = por %p780_p1, %p52_p0  ;;  %p437_p5 = scmp.ge.s32.totalorder %s717_s17, 1 }
   0xd   : > { %p795_p6 = por %p126_p3, %p52_p0  ;;  %p133_p7 = scmp.lt.s32.totalorder %s717_s17, 3 }
   0xe   : > { %s977_s22 = scalar_select %p790_p4, 1, 0 }
   0xf   : > { %s978_s23 = scalar_select %p795_p6, 1, 0 }
  0x10   : > { %p800_p8 = pnand %p437_p5, %p133_p7  ;;  %s719_s25 = smov [#allocation5]  }
  0x11   : > { %s145_s26 = sshll.u32 %s719_s25, 4  ;;  %s32_s28 = sadd.s32 1, %s713_s16  ;;  %s146_s26 = int_to_ptr.vmem [resolvable:$true] %s145_s26 }
  0x12   : > { %s979_s24 = scalar_select %p800_p8, 1, 0 }
  0x13   : > { %p496_p9 = pneg %p800_p8  ;;  %s573_s4 = scalar_lea.hbm %s968_s1, 1024 }
  0x14   : > { %p574_p12 = scmp.ne.s32.totalorder %s968_s1, %s573_s4  ;;  %p580_p5 = scmp.lt.u32.totalorder %s573_s4, %s968_s1 }
  0x15   : > { %p809_p11 = pnand %p496_p9, %p780_p1 }
  0x17   : > { %p575_p13 = pneg %p809_p11 }
  0x19   : > { %p576_p0 = pnand %p575_p13, %p574_p12 }
  0x1b   : > { %p577_p3 = pneg %p576_p0 }
  0x1d   : > { %p582_p7 = pnand %p580_p5, %p577_p3 }
  0x1f   : > { %585 = shalt.err (!%p582_p7)
}
  0x20   : > { %s586_s9 = scalar_lea.vmem %s146_s26, 1024  ;;  %p594_p1 = scmp.lt.s32.totalorder %s146_s26, %s146_s26 }
  0x21   : > { %p587_p9 = scmp.ne.s32.totalorder %s146_s26, %s586_s9  ;;  %p595_p4 = scmp.lt.s32.totalorder %s586_s9, %s586_s9 }
  0x23   : > { %p589_p10 = pnand %p587_p9, %p575_p13  ;;  %p596_p8 = por %p595_p4, %p594_p1 }
  0x25   : > { %p590_p6 = pneg %p589_p10 }
  0x27   : > { %p597_p2 = pnand %p596_p8, %p590_p6 }
  0x29   : > { %600 = shalt.err (!%p597_p2)
}
  0x2a   : > { %s720_s10 = smov 64   ;;  %s721_s11 = smov 4  }
  0x2b   : > { %499 = dma.hbm_to_vmem [thread:$0]  (!%p809_p11), %s968_s1, 1024, %s146_s26, [#allocation6], %s720_s10, %s720_s10, %s721_s11  }
  0x2c   : > { %p34_p1 = scmp.ge.s32.totalorder %s32_s28, 2  ;;  %s39_s25 = sadd.s32 1, %s705_s14 }
  0x2d   : > { %p46_p2 = scmp.ne.s32.totalorder %s705_s14, %s701_s13  ;;  %p47_p4 = scmp.eq.s32.totalorder %s717_s17, 0 }
  0x2e   : > { %s996_s28 = smov (%p34_p1, %s32_s28), 0  ;;  %p982_p8 = scmp.ne.s32.totalorder %s976_s21, 0 }
  0x2f   : > { %p836_p6 = por %p47_p4, %p46_p2  ;;  %s36_s27 = ssub.s32 %s713_s16, %s996_s28 }
  0x30   : > { %p842_p10 = por %p982_p8, %p46_p2  ;;  %p509_p12 = scmp.lt.s32.totalorder %s717_s17, 2 }
  0x31   : > { %p37_p11 = scmp.eq.s32.totalorder %s36_s27, 0  ;;  %s162_s26 = sand.u32 1, %s705_s14  }
  0x32   : > { %s440_s4 = sshll.u32 %s162_s26, 3  ;;  %s441_s6 = sshll.u32 %s713_s16, 7 }
  0x33   : > { %s851_s5 = scalar_select %p37_p11, %s705_s14, %s39_s25  }
  0x34   : > { %s857_s9 = scalar_lea.hbm %s967_s0, %s441_s6  ;;  %s166_s21 = scalar_lea.vmem [#allocation2], %s440_s4 }
  0x35   : > { %s173_s10 = sshll.u32 %s166_s21, 4  ;;  %p863_p13 = pnand %p509_p12, %p836_p6  ;;  %s859_s10 = int_to_ptr.vmem [resolvable:$true] %s173_s10 }
  0x36   : > { %s163_s18 = scalar_lea.sflag [#allocation3], %s162_s26  ;;  %s601_s19 = scalar_lea.hbm %s857_s9, 128 }
  0x37   : > { %p602_p0 = scmp.ne.s32.totalorder %s857_s9, %s601_s19  ;;  %p603_p3 = pneg %p863_p13 }
  0x38   : > { %s606_s4 = scalar_lea.hbm %s967_s0, 256  ;;  %p607_p9 = scmp.lt.u32.totalorder %s857_s9, %s967_s0 }
  0x39   : > { %p604_p5 = pnand %p603_p3, %p602_p0  ;;  %p608_p1 = scmp.lt.u32.totalorder %s606_s4, %s601_s19 }
  0x3a   : > { %p610_p4 = scmp.lt.u32.totalorder %s601_s19, %s857_s9 }
  0x3b   : > { %p605_p7 = pneg %p604_p5  ;;  %p609_p2 = por %p608_p1, %p607_p9 }
  0x3d   : > { %p611_p6 = por %p610_p4, %p609_p2 }
  0x3f   : > { %p612_p8 = pnand %p611_p6, %p605_p7 }
  0x41   : > { %615 = shalt.err (!%p612_p8)
}
  0x42   : > { %s616_s26 = scalar_lea.vmem %s859_s10, 128  ;;  %s722_s7 = smov [#allocation2]  }
  0x43   : > { %p617_p12 = scmp.ne.s32.totalorder %s859_s10, %s616_s26  ;;  %s621_s8 = sshll.u32 %s722_s7, 4  ;;  %s622_s8 = int_to_ptr.vmem [resolvable:$false] %s621_s8 }
  0x44   : > { %s623_s21 = scalar_lea.vmem %s622_s8, 256  ;;  %p624_p5 = scmp.lt.s32.totalorder %s859_s10, %s622_s8 }
  0x45   : > { %p619_p11 = pnand %p617_p12, %p603_p3  ;;  %p625_p9 = scmp.lt.s32.totalorder %s623_s21, %s616_s26 }
  0x47   : > { %p620_p0 = pneg %p619_p11  ;;  %p626_p1 = por %p625_p9, %p624_p5 }
  0x49   : > { %p627_p2 = pnand %p626_p1, %p620_p0 }
  0x4b   : > { %630 = shalt.err (!%p627_p2)
}
  0x4c   : > { %503 = dma.hbm_to_vmem [thread:$0]  (!%p863_p13), %s857_s9, 128, %s859_s10, %s163_s18  }
  0x4d   : > { %p985_p7 = scmp.ne.s32.totalorder %s979_s24, 0 }
  0x4e   : > { %s895_s19 = sand.u32 (!%p985_p7), 1, %s701_s13   ;;  %p986_p3 = scmp.ne.s32.totalorder (!%p985_p7), %s977_s22, 0 }
  0x4f   : > { %182 = sbr.rel (%p985_p7) target bundleno = 353 (0x161), region = 32  ;;  %s443_s25 = sshll.u32 (!%p985_p7), %s895_s19, 3 }
  0x50   : > { %s185_s27 = scalar_lea.sflag (!%p985_p7), [#allocation3], %s895_s19  ;;  %s188_s4 = scalar_lea.vmem (!%p985_p7), [#allocation2], %s443_s25 }
  0x56   : > { %684 = dma.done.wait (%p986_p3), %s185_s27, 128  }
  0x57   : > { %686 = vsyncadd (%p986_p3), %s185_s27, 4294967168  ;;  %p987_p13 = scmp.ne.s32.totalorder %s975_s20, 0 }
  0x59   : > { %688 = dma.done.wait (%p987_p13), [#allocation6], 1024  }
  0x5a   : > { %690 = vsyncadd (%p987_p13), [#allocation6], 4294966272  ;;  %v723_v0 = vmov 0.0   ;;  %vm724_vm0 = vmmov 0   ;;  %v565_v1 = vld [vmem:[#allocation5] sm:$0xff]   ;;  %v566_v2 = vld [vmem:[#allocation5 + $0x8] sm:$0xff]  }
  0x5b   : > { %468 = vmatprep.subr.bf16.mxu0 %v723_v0  ;;  %484 = vmatprep.mubr.msk.bf16.mxu0 %vm724_vm0, %v723_v0  ;;  %v567_v3 = vld [vmem:[#allocation5 + $0x10] sm:$0xff]   ;;  %v568_v4 = vld [vmem:[#allocation5 + $0x18] sm:$0xff]   ;;  %v569_v5 = vld [vmem:[#allocation5 + $0x20] sm:$0xff]   ;;  %s456_s24 = sshll.u32 %s709_s15, 7  ;;  %s214_s9 = scalar_lea.vmem [#allocation7], %s443_s25 }
  0x5c   : > { %469 = vmatpush3.bf16.msra.mxu0 %v565_v1  ;;  %v570_v6 = vld [vmem:[#allocation5 + $0x28] sm:$0xff]   ;;  %v571_v7 = vld [vmem:[#allocation5 + $0x30] sm:$0xff]   ;;  %v572_v8 = vld [vmem:[#allocation5 + $0x38] sm:$0xff]   ;;  %s346_s10 = sshll.u32 %s214_s9, 4  ;;  %s918_s29 = scalar_lea.hbm %s970_s3, %s456_s24  ;;  %s920_s10 = int_to_ptr.vmem [resolvable:$true] %s346_s10 }
  0x5d   : > { %470 = vmatprep.subr.bf16.mxu0 %v723_v0  ;;  %v216_v9 = vld [vmem:[%s188_s4] sm:$0xff]  ;;  %s332_s15 = scalar_lea.sflag [#allocation4], %s895_s19  ;;  %s631_s6 = scalar_lea.vmem %s920_s10, 128 }
  0x5e   : > { %v217_v10 = vpack.c.bf16 %v216_v9, %v216_v9  ;;  %v446_v11 = vld [vmem:[%s969_s2] ss:$0 sm:$0xff]  ;;  %p632_p4 = scmp.ne.s32.totalorder %s920_s10, %s631_s6  ;;  %s725_s26 = smov [#allocation7]  }
  0x5f   : > { %s635_s7 = sshll.u32 %s725_s26, 4  ;;  %s636_s7 = int_to_ptr.vmem [resolvable:$false] %s635_s7 }
  0x60   : > { %471 = vmatpush3.bf16.msra.mxu0 %v566_v2  ;;  %p633_p6 = pnand %p632_p4, %p842_p10  ;;  %s637_s8 = scalar_lea.vmem %s636_s7, 256 }
  0x61   : > { %472 = vmatprep.subr.bf16.mxu0 %v723_v0  ;;  %p638_p12 = scmp.lt.s32.totalorder %s920_s10, %s636_s7  ;;  %p639_p11 = scmp.lt.s32.totalorder %s637_s8, %s631_s6 }
  0x62   : > { %p634_p8 = pneg %p633_p6 }
  0x63   : > { %p640_p0 = por %p639_p11, %p638_p12 }
  0x64   : > { %473 = vmatpush3.bf16.msra.mxu0 %v567_v3 }
  0x65   : > { %474 = vmatprep.subr.bf16.mxu0 %v723_v0  ;;  %p641_p5 = pnand %p640_p0, %p634_p8 }
  0x68   : > { %475 = vmatpush3.bf16.msra.mxu0 %v568_v4 }
  0x69   : > { %476 = vmatprep.subr.bf16.mxu0 %v723_v0 }
  0x6c   : > { %477 = vmatpush3.bf16.msra.mxu0 %v569_v5 }
  0x6d   : > { %478 = vmatprep.subr.bf16.mxu0 %v723_v0 }
  0x70   : > { %479 = vmatpush3.bf16.msra.mxu0 %v570_v6 }
  0x71   : > { %480 = vmatprep.subr.bf16.mxu0 %v723_v0 }
  0x74   : > { %481 = vmatpush3.bf16.msra.mxu0 %v571_v7 }
  0x75   : > { %482 = vmatprep.subr.bf16.mxu0 %v723_v0 }
  0x78   : > { %483 = vmatpush3.bf16.msra.mxu0 %v572_v8 }
  0x7b   : > { %485 = vmatmul.mubr.bf16.vlgmr.msra.gmra.mrb[0].mxu0 %v217_v10 }
 0x14e   : > { %v323_v12 = vpop.f32.mrb[0].mxu0 }
 0x14f   : > { %v324_v13 = vadd.f32 %v446_v11, %v323_v12  ;;  %v486_v14 = vpop.f32.mrb[1].mxu0 }
 0x150   : > { %v326_v15 = vpop.f32.mrb[2].mxu0 }
 0x151   : > { %v329_v16 = vadd.f32 %v324_v13, %v216_v9  ;;  %v487_v17 = vpop.f32.mrb[3].mxu0 }
 0x153   : > { %330 = vst [vmem:[%s214_s9] sm:$0xff] %v329_v16 }
 0x154   : > { %644 = shalt.err (!%p641_p5)
}
 0x155   : > { %s645_s21 = scalar_lea.hbm %s918_s29, 128  ;;  %s649_s27 = scalar_lea.hbm %s970_s3, 256 }
 0x156   : > { %p646_p9 = scmp.ne.s32.totalorder %s918_s29, %s645_s21  ;;  %p650_p7 = scmp.lt.u32.totalorder %s918_s29, %s970_s3 }
 0x157   : > { %p651_p3 = scmp.lt.u32.totalorder %s649_s27, %s645_s21  ;;  %p653_p4 = scmp.lt.u32.totalorder %s645_s21, %s918_s29 }
 0x158   : > { %p647_p1 = pnand %p646_p9, %p842_p10 }
 0x159   : > { %p652_p13 = por %p651_p3, %p650_p7 }
 0x15a   : > { %p648_p2 = pneg %p647_p1 }
 0x15b   : > { %p654_p6 = por %p653_p4, %p652_p13 }
 0x15d   : > { %p655_p8 = pnand %p654_p6, %p648_p2 }
 0x15f   : > { %658 = shalt.err (!%p655_p8)
}
 0x160   : > { %494 = dma.vmem_to_hbm [thread:$0]  (%p842_p10), %s920_s10, 128, %s918_s29, %s332_s15  }
 0x161 PF: > { %s358_s22 = sand.u32 1, %s697_s12   ;;  %p988_p12 = scmp.ne.s32.totalorder %s978_s23, 0 }
 0x162   : > { %p989_p11 = scmp.ge.s32.totalorder %s717_s17, 2  ;;  %s359_s24 = scalar_lea.sflag [#allocation4], %s358_s22 }
 0x164   : > { %p505_p0 = pnand %p989_p11, %p988_p12 }
 0x166   : > { %692 = dma.done.wait (!%p505_p0), %s359_s24, 128  }
 0x167   : > { %694 = vsyncadd (!%p505_p0), %s359_s24, 4294967168  ;;  %s20_s17 = sadd.s32 1, %s717_s17   ;;  %s990_s12 = smov %s701_s13 }
 0x168   : > { %p17_p5 = scmp.ge.s32.totalorder %s20_s17, 4   ;;  %s991_s13 = smov %s705_s14 }
 0x169   : > { %s992_s14 = smov %s851_s5  ;;  %s993_s15 = smov %s713_s16 }
 0x16a   : > { %s994_s16 = smov %s996_s28  ;;  %19 = sbr.rel (!%p17_p5) target bundleno = 7 (0x7), region = 81 }
 0x171   :  { %364 = vsyncpa [#allocation3], 1 }
 0x172   :  { %366 = vsyncpa [#allocation3 + $0x1], 1 }
 0x173   :  { %367 = vsyncpa [#allocation6], 1 }
 0x174   :  { %368 = vsyncpa [#allocation4], 1 }
 0x175   :  { %370 = vsyncpa [#allocation4 + $0x1], 1 }

</bundles_post_ra>
